<compile_context>
chip_gen: v7x
topology: tpu7x:2x2x1
jax: 0.10.0
libtpu: 0.0.40
codegen_flags: <defaults>
</compile_context>

<pallas_src>
import functools

import jax
import jax.numpy as jnp
from jax.experimental import pallas as pl
from jax.experimental.pallas import tpu as pltpu

LANES = 128
SUBLANES = 8
TILE_ROWS_MAX = 8192            # (8192, 128) f32 block = 4 MiB / input / step
VMEM_LIMIT_BYTES = 40 * 1024 * 1024


@functools.lru_cache(maxsize=None)
def _num_tensorcores():
    """2 on v7x (2 TC/chip), 1 on single-TensorCore generations."""
    try:
        kind = jax.devices()[0].device_kind.lower()
    except Exception:  # pragma: no cover - backend not initialized
        return 1
    return 2 if "v7" in kind else 1


def _dice_bce_kernel(x_ref, t_ref, out_ref, acc_ref, *,
                     nblocks, bpc, last_rows, all_full):
    c = pl.program_id(0)          # core-split axis ("parallel")
    k = pl.program_id(1)          # reduction axis ("arbitrary")
    g = c * bpc + k               # global block index

    @pl.when(k == 0)
    def _init():
        acc_ref[...] = jnp.zeros_like(acc_ref)

    def _red(v):
        # (R, 128) -> (R//8, 8, 128) -> sum over leading axis: pure vreg adds
        # on the VPU; the cross-lane reduction happens once, outside, on the
        # tiny (ncores, 4, 8, 128) output.
        return v.reshape(-1, SUBLANES, LANES).sum(axis=0)

    def _accumulate(xv, tv):
        xv = xv.astype(jnp.float32)
        tv = tv.astype(jnp.float32)
        e = jnp.exp(-jnp.abs(xv))                        # reused twice
        sp = jnp.maximum(xv, 0.0) + jnp.log1p(e)         # softplus(x)
        p = jnp.where(xv >= 0.0, 1.0, e) / (1.0 + e)     # sigmoid(x), stable
        bce = sp - tv * xv                               # logits-form BCE
        acc_ref[0] += _red(p)
        acc_ref[1] += _red(tv)
        acc_ref[2] += _red(p * tv)
        acc_ref[3] += _red(bce)

    if all_full:
        # Every grid step maps to a distinct, fully-valid block: no branching.
        _accumulate(x_ref[...], t_ref[...])
    else:
        @pl.when(g < nblocks - 1)
        def _bulk():
            _accumulate(x_ref[...], t_ref[...])

        @pl.when(g == nblocks - 1)
        def _last():
            # Static slice of the partial last block (last_rows is a Python
            # int, multiple of the row alignment) -> no mask, no iota.
            _accumulate(x_ref[:last_rows, :], t_ref[:last_rows, :])
        # Clamped re-read steps (g >= nblocks) skip both branches.

    @pl.when(k == bpc - 1)
    def _finalize():
        out_ref[0] = acc_ref[...]


def _partial_sums(xe, te):
    """Tiny (<2048-element) ragged-tail reduce done in plain JAX."""
    xe = xe.astype(jnp.float32)
    te = te.astype(jnp.float32)
    e = jnp.exp(-jnp.abs(xe))
    sp = jnp.maximum(xe, 0.0) + jnp.log1p(e)
    p = jnp.where(xe >= 0.0, 1.0, e) / (1.0 + e)
    return jnp.stack([p.sum(), te.sum(), (p * te).sum(), (sp - te * xe).sum()])


@functools.partial(jax.jit, static_argnames=("smooth", "tile_rows_max"))
def dice_bce_loss(inputs, targets, smooth=1.0, tile_rows_max=TILE_ROWS_MAX):
    n = inputs.size
    x = inputs.reshape(-1)
    t = targets.reshape(-1)

    # Packed (16/8-bit) dtypes need (16,128) tiles; f32 needs (8,128).
    row_align = 16 if min(x.dtype.itemsize, t.dtype.itemsize) < 4 else SUBLANES
    elem_align = row_align * LANES
    n_main = (n // elem_align) * elem_align          # aligned prefix length

    sums = jnp.zeros((4,), jnp.float32)

    if n_main > 0:
        rows = n_main // LANES                        # multiple of row_align
        xm = x[:n_main].reshape(rows, LANES)          # identity when aligned
        tm = t[:n_main].reshape(rows, LANES)

        tile_rows = min(tile_rows_max, rows)
        tile_rows = max(row_align, (tile_rows // row_align) * row_align)
        nblocks = pl.cdiv(rows, tile_rows)
        ncores = min(_num_tensorcores(), nblocks)     # 1 on v5e/v6e, 2 on v7x
        bpc = pl.cdiv(nblocks, ncores)                # blocks per core
        last_rows = rows - (nblocks - 1) * tile_rows  # static, mult. of align
        all_full = (last_rows == tile_rows) and (ncores * bpc == nblocks)

        kernel = functools.partial(_dice_bce_kernel, nblocks=nblocks, bpc=bpc,
                                   last_rows=last_rows, all_full=all_full)

        def in_map(c, k):
            # Clamp so a (rare) extra step on the second core never DMAs OOB;
            # its contribution is skipped inside the kernel.
            return (jnp.minimum(c * bpc + k, nblocks - 1), 0)

        tile_spec = pl.BlockSpec((tile_rows, LANES), in_map)
        out_bytes = ncores * 4 * SUBLANES * LANES * 4

        out = pl.pallas_call(
            kernel,
            out_shape=jax.ShapeDtypeStruct((ncores, 4, SUBLANES, LANES),
                                           jnp.float32),
            grid_spec=pltpu.PrefetchScalarGridSpec(
                num_scalar_prefetch=0,
                grid=(ncores, bpc),
                in_specs=[tile_spec, tile_spec],
                out_specs=pl.BlockSpec((1, 4, SUBLANES, LANES),
                                       lambda c, k: (c, 0, 0, 0)),
                scratch_shapes=[pltpu.VMEM((4, SUBLANES, LANES), jnp.float32)],
            ),
            compiler_params=pltpu.CompilerParams(
                dimension_semantics=("parallel", "arbitrary"),
                vmem_limit_bytes=VMEM_LIMIT_BYTES),
            cost_estimate=pl.CostEstimate(
                flops=12 * n_main,
                transcendentals=3 * n_main,
                bytes_accessed=(n_main * x.dtype.itemsize
                                + n_main * t.dtype.itemsize + out_bytes)),
        )(xm, tm)
        sums = sums + out.sum(axis=(0, 2, 3))         # (4,) tiny final reduce

    if n_main < n:
        sums = sums + _partial_sums(x[n_main:], t[n_main:])

    sum_p, sum_t, inter, bce_sum = sums[0], sums[1], sums[2], sums[3]
    bce_mean = bce_sum / jnp.float32(n)
    dice_loss = 1.0 - (2.0 * inter + smooth) / (sum_p + sum_t + smooth)
    return bce_mean + dice_loss


def _reference(inputs, targets, smooth=1.0):
    x = inputs.reshape(-1).astype(jnp.float32)
    t = targets.reshape(-1).astype(jnp.float32)
    p = jax.nn.sigmoid(x)
    inter = jnp.sum(p * t)
    dice = 1.0 - (2.0 * inter + smooth) / (jnp.sum(p) + jnp.sum(t) + smooth)
    bce = jnp.mean(-(t * jnp.log(p) + (1.0 - t) * jnp.log1p(-p)))
    return bce + dice


if __name__ == "__main__":
    key = jax.random.PRNGKey(0)
    k1, k2, k3, k4, k5, k6 = jax.random.split(key, 6)

    # 1) Main check: aligned NCHW shape (same convention as the PyTorch module).
    x = jax.random.normal(k1, (2, 4, 16, 16), dtype=jnp.float32)
    tgt = (jax.random.uniform(k2, (2, 4, 16, 16)) > 0.5).astype(jnp.float32)
    out = dice_bce_loss(x, tgt, smooth=1.0)
    jax.block_until_ready(out)
    ref = _reference(x, tgt, smooth=1.0)
    assert jnp.allclose(out, ref, atol=1e-4, rtol=1e-4), (out, ref)

    # 2) Misaligned size: exercises the no-pad aligned-prefix path + JAX tail.
    x2 = jax.random.normal(k3, (2, 5, 181, 181), dtype=jnp.float32)
    t2 = (jax.random.uniform(k4, (2, 5, 181, 181)) > 0.5).astype(jnp.float32)
    out2 = dice_bce_loss(x2, t2, smooth=1.0)
    jax.block_until_ready(out2)
    ref2 = _reference(x2, t2, smooth=1.0)
    assert jnp.allclose(out2, ref2, atol=1e-3, rtol=1e-3), (out2, ref2)

    # 3) Multi-block grid with a partial (statically sliced) last block.
    x3 = jax.random.normal(k5, (1, 3, 100, 40), dtype=jnp.float32)
    t3 = (jax.random.uniform(k6, (1, 3, 100, 40)) > 0.5).astype(jnp.float32)
    out3 = dice_bce_loss(x3, t3, smooth=1.0, tile_rows_max=32)
    jax.block_until_ready(out3)
    ref3 = _reference(x3, t3, smooth=1.0)
    assert jnp.allclose(out3, ref3, atol=1e-3, rtol=1e-3), (out3, ref3)

    # 4) bf16 inputs stream straight into the kernel (half the HBM bytes).
    xb = x.astype(jnp.bfloat16)
    tb = tgt.astype(jnp.bfloat16)
    outb = dice_bce_loss(xb, tb, smooth=1.0)
    jax.block_until_ready(outb)
    refb = _reference(xb.astype(jnp.float32), tb.astype(jnp.float32), 1.0)
    assert jnp.allclose(outb, refb, atol=2e-2, rtol=2e-2), (outb, refb)

    print("KERNEL_OK")
</pallas_src>

<mosaic_0001>
module attributes {stable_mosaic.version = 11 : i64} {
  func.func @_dice_bce_kernel(%arg0: i32, %arg1: i32, %arg2: memref<16x128xf32, #tpu.memory_space<vmem>>, %arg3: memref<16x128xf32, #tpu.memory_space<vmem>>, %arg4: memref<1x4x8x128xf32, #tpu.memory_space<vmem>>, %arg5: memref<4x8x128xf32, #tpu.memory_space<vmem>>) attributes {dimension_semantics = [#tpu.dimension_semantics<parallel>, #tpu.dimension_semantics<arbitrary>], iteration_bounds = array<i64: 1, 1>, scalar_prefetch = 0 : i64, scratch_operands = 1 : i64, tpu.core_type = #tpu.core_type<tc>, window_params = [{transform_indices = @transform_0, window_bounds = array<i64: 16, 128>}, {transform_indices = @transform_1, window_bounds = array<i64: 16, 128>}, {transform_indices = @transform_2, window_bounds = array<i64: 1, 4, 8, 128>}]} {
    %c0_i32 = arith.constant 0 : i32
    %0 = arith.cmpi eq, %arg1, %c0_i32 : i32
    %1 = arith.extui %0 : i1 to i32
    %c0_i32_0 = arith.constant 0 : i32
    %2 = arith.cmpi ne, %1, %c0_i32_0 : i32
    scf.if %2 {
      %cst_35 = arith.constant 0.000000e+00 : f32
      %58 = vector.broadcast %cst_35 : f32 to vector<4x8x128xf32>
      %c0_36 = arith.constant 0 : index
      %c0_37 = arith.constant 0 : index
      %c0_38 = arith.constant 0 : index
      %59 = vector.load %arg5[%c0_36, %c0_37, %c0_38] : memref<4x8x128xf32, #tpu.memory_space<vmem>>, vector<4x8x128xf32>
      tpu.vector_store %arg5[%c0_36, %c0_37, %c0_38], %58 {strides = array<i32>} : memref<4x8x128xf32, #tpu.memory_space<vmem>>, vector<4x8x128xf32>,
    } else {
    }
    %c0 = arith.constant 0 : index
    %c0_1 = arith.constant 0 : index
    %3 = vector.load %arg2[%c0, %c0_1] : memref<16x128xf32, #tpu.memory_space<vmem>>, vector<16x128xf32>
    %c0_2 = arith.constant 0 : index
    %c0_3 = arith.constant 0 : index
    %4 = vector.load %arg3[%c0_2, %c0_3] : memref<16x128xf32, #tpu.memory_space<vmem>>, vector<16x128xf32>
    %5 = math.absf %3 : vector<16x128xf32>
    %cst = arith.constant 0.000000e+00 : f32
    %6 = vector.broadcast %cst : f32 to vector<16x128xf32>
    %7 = arith.subf %6, %5 : vector<16x128xf32>
    %8 = math.exp %7 : vector<16x128xf32>
    %cst_4 = arith.constant 0.000000e+00 : f32
    %9 = vector.broadcast %cst_4 : f32 to vector<16x128xf32>
    %10 = arith.maximumf %3, %9 : vector<16x128xf32>
    %11 = math.log1p %8 : vector<16x128xf32>
    %12 = arith.addf %10, %11 : vector<16x128xf32>
    %cst_5 = arith.constant 0.000000e+00 : f32
    %13 = vector.broadcast %cst_5 : f32 to vector<16x128xf32>
    %14 = arith.cmpf oge, %3, %13 : vector<16x128xf32>
    %cst_6 = arith.constant 1.000000e+00 : f32
    %15 = vector.broadcast %cst_6 : f32 to vector<16x128xf32>
    %16 = arith.select %14, %15, %8 : vector<16x128xi1>, vector<16x128xf32>
    %cst_7 = arith.constant 1.000000e+00 : f32
    %17 = vector.broadcast %cst_7 : f32 to vector<16x128xf32>
    %18 = arith.addf %17, %8 : vector<16x128xf32>
    %19 = arith.divf %16, %18 : vector<16x128xf32>
    %20 = arith.mulf %4, %3 : vector<16x128xf32>
    %21 = arith.subf %12, %20 : vector<16x128xf32>
    %c0_8 = arith.constant 0 : index
    %c0_9 = arith.constant 0 : index
    %c0_10 = arith.constant 0 : index
    %22 = vector.load %arg5[%c0_8, %c0_9, %c0_10] : memref<4x8x128xf32, #tpu.memory_space<vmem>>, vector<1x8x128xf32>
    %23 = vector.shape_cast %22 : vector<1x8x128xf32> to vector<8x128xf32>
    %24 = vector.shape_cast %19 : vector<16x128xf32> to vector<2x8x128xf32>
    %cst_11 = arith.constant dense<0.000000e+00> : vector<8x128xf32>
    %25 = vector.multi_reduction <add>, %24, %cst_11 [0] : vector<2x8x128xf32> to vector<8x128xf32>
    %26 = arith.addf %23, %25 : vector<8x128xf32>
    %c0_12 = arith.constant 0 : index
    %c0_13 = arith.constant 0 : index
    %c0_14 = arith.constant 0 : index
    %27 = vector.load %arg5[%c0_12, %c0_13, %c0_14] : memref<4x8x128xf32, #tpu.memory_space<vmem>>, vector<1x8x128xf32>
    %28 = vector.shape_cast %27 : vector<1x8x128xf32> to vector<8x128xf32>
    %29 = vector.shape_cast %26 : vector<8x128xf32> to vector<1x8x128xf32>
    tpu.vector_store %arg5[%c0_12, %c0_13, %c0_14], %29 {strides = array<i32>} : memref<4x8x128xf32, #tpu.memory_space<vmem>>, vector<1x8x128xf32>,
    %c1 = arith.constant 1 : index
    %c0_15 = arith.constant 0 : index
    %c0_16 = arith.constant 0 : index
    %30 = vector.load %arg5[%c1, %c0_15, %c0_16] : memref<4x8x128xf32, #tpu.memory_space<vmem>>, vector<1x8x128xf32>
    %31 = vector.shape_cast %30 : vector<1x8x128xf32> to vector<8x128xf32>
    %32 = vector.shape_cast %4 : vector<16x128xf32> to vector<2x8x128xf32>
    %cst_17 = arith.constant dense<0.000000e+00> : vector<8x128xf32>
    %33 = vector.multi_reduction <add>, %32, %cst_17 [0] : vector<2x8x128xf32> to vector<8x128xf32>
    %34 = arith.addf %31, %33 : vector<8x128xf32>
    %c1_18 = arith.constant 1 : index
    %c0_19 = arith.constant 0 : index
    %c0_20 = arith.constant 0 : index
    %35 = vector.load %arg5[%c1_18, %c0_19, %c0_20] : memref<4x8x128xf32, #tpu.memory_space<vmem>>, vector<1x8x128xf32>
    %36 = vector.shape_cast %35 : vector<1x8x128xf32> to vector<8x128xf32>
    %37 = vector.shape_cast %34 : vector<8x128xf32> to vector<1x8x128xf32>
    tpu.vector_store %arg5[%c1_18, %c0_19, %c0_20], %37 {strides = array<i32>} : memref<4x8x128xf32, #tpu.memory_space<vmem>>, vector<1x8x128xf32>,
    %c2 = arith.constant 2 : index
    %c0_21 = arith.constant 0 : index
    %c0_22 = arith.constant 0 : index
    %38 = vector.load %arg5[%c2, %c0_21, %c0_22] : memref<4x8x128xf32, #tpu.memory_space<vmem>>, vector<1x8x128xf32>
    %39 = vector.shape_cast %38 : vector<1x8x128xf32> to vector<8x128xf32>
    %40 = arith.mulf %19, %4 : vector<16x128xf32>
    %41 = vector.shape_cast %40 : vector<16x128xf32> to vector<2x8x128xf32>
    %cst_23 = arith.constant dense<0.000000e+00> : vector<8x128xf32>
    %42 = vector.multi_reduction <add>, %41, %cst_23 [0] : vector<2x8x128xf32> to vector<8x128xf32>
    %43 = arith.addf %39, %42 : vector<8x128xf32>
    %c2_24 = arith.constant 2 : index
    %c0_25 = arith.constant 0 : index
    %c0_26 = arith.constant 0 : index
    %44 = vector.load %arg5[%c2_24, %c0_25, %c0_26] : memref<4x8x128xf32, #tpu.memory_space<vmem>>, vector<1x8x128xf32>
    %45 = vector.shape_cast %44 : vector<1x8x128xf32> to vector<8x128xf32>
    %46 = vector.shape_cast %43 : vector<8x128xf32> to vector<1x8x128xf32>
    tpu.vector_store %arg5[%c2_24, %c0_25, %c0_26], %46 {strides = array<i32>} : memref<4x8x128xf32, #tpu.memory_space<vmem>>, vector<1x8x128xf32>,
    %c3 = arith.constant 3 : index
    %c0_27 = arith.constant 0 : index
    %c0_28 = arith.constant 0 : index
    %47 = vector.load %arg5[%c3, %c0_27, %c0_28] : memref<4x8x128xf32, #tpu.memory_space<vmem>>, vector<1x8x128xf32>
    %48 = vector.shape_cast %47 : vector<1x8x128xf32> to vector<8x128xf32>
    %49 = vector.shape_cast %21 : vector<16x128xf32> to vector<2x8x128xf32>
    %cst_29 = arith.constant dense<0.000000e+00> : vector<8x128xf32>
    %50 = vector.multi_reduction <add>, %49, %cst_29 [0] : vector<2x8x128xf32> to vector<8x128xf32>
    %51 = arith.addf %48, %50 : vector<8x128xf32>
    %c3_30 = arith.constant 3 : index
    %c0_31 = arith.constant 0 : index
    %c0_32 = arith.constant 0 : index
    %52 = vector.load %arg5[%c3_30, %c0_31, %c0_32] : memref<4x8x128xf32, #tpu.memory_space<vmem>>, vector<1x8x128xf32>
    %53 = vector.shape_cast %52 : vector<1x8x128xf32> to vector<8x128xf32>
    %54 = vector.shape_cast %51 : vector<8x128xf32> to vector<1x8x128xf32>
    tpu.vector_store %arg5[%c3_30, %c0_31, %c0_32], %54 {strides = array<i32>} : memref<4x8x128xf32, #tpu.memory_space<vmem>>, vector<1x8x128xf32>,
    %c0_i32_33 = arith.constant 0 : i32
    %55 = arith.cmpi eq, %arg1, %c0_i32_33 : i32
    %56 = arith.extui %55 : i1 to i32
    %c0_i32_34 = arith.constant 0 : i32
    %57 = arith.cmpi ne, %56, %c0_i32_34 : i32
    scf.if %57 {
      %c0_35 = arith.constant 0 : index
      %c0_36 = arith.constant 0 : index
      %c0_37 = arith.constant 0 : index
      %58 = vector.load %arg5[%c0_35, %c0_36, %c0_37] : memref<4x8x128xf32, #tpu.memory_space<vmem>>, vector<4x8x128xf32>
      %c0_38 = arith.constant 0 : index
      %c0_39 = arith.constant 0 : index
      %c0_40 = arith.constant 0 : index
      %c0_41 = arith.constant 0 : index
      %59 = vector.load %arg4[%c0_38, %c0_39, %c0_40, %c0_41] : memref<1x4x8x128xf32, #tpu.memory_space<vmem>>, vector<1x4x8x128xf32>
      %60 = vector.shape_cast %59 : vector<1x4x8x128xf32> to vector<4x8x128xf32>
      %61 = vector.shape_cast %58 : vector<4x8x128xf32> to vector<1x4x8x128xf32>
      tpu.vector_store %arg4[%c0_38, %c0_39, %c0_40, %c0_41], %61 {strides = array<i32>} : memref<1x4x8x128xf32, #tpu.memory_space<vmem>>, vector<1x4x8x128xf32>,
    } else {
    }
    return
  }
  func.func @transform_0(%arg0: i32, %arg1: i32) -> (i32, i32) {
    %c1_i32 = arith.constant 1 : i32
    %0 = arith.muli %arg0, %c1_i32 : i32
    %1 = arith.addi %0, %arg1 : i32
    %c0_i32 = arith.constant 0 : i32
    %2 = arith.minsi %1, %c0_i32 : i32
    %c0_i32_0 = arith.constant 0 : i32
    %c0_i32_1 = arith.constant 0 : i32
    return %2, %c0_i32_0 : i32, i32
  }
  func.func @transform_1(%arg0: i32, %arg1: i32) -> (i32, i32) {
    %c1_i32 = arith.constant 1 : i32
    %0 = arith.muli %arg0, %c1_i32 : i32
    %1 = arith.addi %0, %arg1 : i32
    %c0_i32 = arith.constant 0 : i32
    %2 = arith.minsi %1, %c0_i32 : i32
    %c0_i32_0 = arith.constant 0 : i32
    %c0_i32_1 = arith.constant 0 : i32
    return %2, %c0_i32_0 : i32, i32
  }
  func.func @transform_2(%arg0: i32, %arg1: i32) -> (i32, i32, i32, i32) {
    %c0_i32 = arith.constant 0 : i32
    %c0_i32_0 = arith.constant 0 : i32
    %c0_i32_1 = arith.constant 0 : i32
    %c0_i32_2 = arith.constant 0 : i32
    return %arg0, %c0_i32, %c0_i32_0, %c0_i32_1 : i32, i32, i32, i32
  }
}

</mosaic_0001>

<bundles_post_ra>
// kernel: dice_bce_loss.1
= control target key start
LH: loop header
LB: loop body
LE: loop exit
PB: predicated region body
PF: predicated region fallthrough
CT: control target
= control target key end

     0   :  { %s236_s0 = inlined_call_operand.vmem [shape: f32[16,128], index: 0, kind: input, shape index: {}]   ;;  %s237_s1 = inlined_call_operand.vmem [shape: f32[16,128], index: 1, kind: input, shape index: {}]   ;;  %s238_s2 = inlined_call_operand.vmem [shape: f32[1,4,8,128], index: 2, kind: output, shape index: {}]  }
   0x1   :  { %v83_v0 = vld [vmem:[%s236_s0] sm:$0xff]  ;;  %v84_v1 = vld [vmem:[%s236_s0 + $0x8] sm:$0xff] }
   0x2   :  { %v87_v2 = vand.u32 2147483647, %v83_v0  ;;  %v88_v3 = vand.u32 2147483647, %v84_v1  ;;  %v85_v4 = vld [vmem:[%s237_s1] sm:$0xff]  ;;  %v86_v5 = vld [vmem:[%s237_s1 + $0x8] sm:$0xff] }
   0x3   :  { %v137_v8 = vadd.f32 %v86_v5, %v85_v4  ;;  %vm117_vm0 = vcmp.ge.f32.partialorder %v83_v0, 0.0  ;;  %vm118_vm1 = vcmp.ge.f32.partialorder %v84_v1, 0.0  ;;  %v95_v29 = vmax.f32 %v83_v0, 0.0 }
   0x4   :  { %v89_v6 = vsub.f32 0.0, %v87_v2  ;;  %v90_v7 = vsub.f32 0.0, %v88_v3  ;;  %v96_v34 = vmax.f32 %v84_v1, 0.0  ;;  %v127_v39 = vmul.f32 %v85_v4, %v83_v0 }
   0x5   :  { %160 = vst [vmem:[%s238_s2 + $0x8] sm:$0xff] %v137_v8  ;;  %v128_v41 = vmul.f32 %v86_v5, %v84_v1 }
   0x6   :  { %v91_v9 = vmul.f32 1.442695, %v89_v6  ;;  %v93_v10 = vmul.f32 1.442695, %v90_v7 }
   0x8   :  { %179 = vpow2.f32 %v91_v9 }
   0x9   :  { %181 = vpow2.f32 %v93_v10 }
  0x12   :  { %v180_v11 = vpop.eup %179 }
  0x13   :  { %v182_v12 = vpop.eup %181  ;;  %v97_v13 = vadd.f32 1.0, %v180_v11  ;;  %v100_v15 = vmul.f32 -0.5, %v180_v11  ;;  %v119_v18 = vsel %vm117_vm0, 1.0, %v180_v11  ;;  %v103_v19 = vand.u32 2147483647, %v180_v11 }
  0x14   :  { %v106_v14 = vadd.f32 1.0, %v182_v12  ;;  %v109_v16 = vmul.f32 -0.5, %v182_v12  ;;  %v120_v21 = vsel %vm118_vm1, 1.0, %v182_v12  ;;  %v112_v22 = vand.u32 2147483647, %v182_v12 }
  0x15   :  { %183 = vrcp.f32 %v97_v13  ;;  %v101_v17 = vadd.f32 1.0, %v100_v15  ;;  %vm221_vm2 = vcmp.lt.f32.partialorder %v103_v19, 0.0004427343 }
  0x16   :  { %185 = vrcp.f32 %v106_v14  ;;  %v110_v20 = vadd.f32 1.0, %v109_v16  ;;  %vm113_vm3 = vcmp.lt.f32.partialorder %v112_v22, 0.0004427343 }
  0x17   :  { %187 = vlog2.f32 %v97_v13  ;;  %v102_v26 = vmul.f32 %v180_v11, %v101_v17 }
  0x18   :  { %189 = vlog2.f32 %v106_v14  ;;  %v111_v31 = vmul.f32 %v182_v12, %v110_v20 }
  0x1f   :  { %v184_v23 = vpop.eup %183 }
  0x20   :  { %v186_v24 = vpop.eup %185  ;;  %v124_v25 = vmul.f32 %v184_v23, %v119_v18 }
  0x21   :  { %v188_v27 = vpop.eup %187  ;;  %v126_v28 = vmul.f32 %v186_v24, %v120_v21 }
  0x22   :  { %v190_v32 = vpop.eup %189  ;;  %v142_v33 = vmul.f32 %v124_v25, %v85_v4  ;;  %v99_v35 = vmul.f32 0.6931472, %v188_v27 }
  0x23   :  { %v132_v36 = vadd.f32 %v126_v28, %v124_v25  ;;  %v143_v37 = vmul.f32 %v126_v28, %v86_v5  ;;  %v108_v38 = vmul.f32 0.6931472, %v190_v32 }
  0x24   :  { %v105_v40 = vsel %vm221_vm2, %v102_v26, %v99_v35 }
  0x25   :  { %159 = vst [vmem:[%s238_s2] sm:$0xff] %v132_v36  ;;  %v144_v42 = vadd.f32 %v143_v37, %v142_v33  ;;  %v114_v43 = vsel %vm113_vm3, %v111_v31, %v108_v38  ;;  %v115_v44 = vadd.f32 %v105_v40, %v95_v29 }
  0x26   :  { %v116_v45 = vadd.f32 %v114_v43, %v96_v34 }
  0x27   :  { %161 = vst [vmem:[%s238_s2 + $0x10] sm:$0xff] %v144_v42  ;;  %v129_v46 = vsub.f32 %v115_v44, %v127_v39 }
  0x28   :  { %v130_v47 = vsub.f32 %v116_v45, %v128_v41 }
  0x2a   :  { %v149_v48 = vadd.f32 %v130_v47, %v129_v46 }
  0x2c   :  { %162 = vst [vmem:[%s238_s2 + $0x18] sm:$0xff] %v149_v48 }

</bundles_post_ra>
